<compile_context>
chip_gen: v7x
topology: tpu7x:2x2x1
jax: 0.10.0
libtpu: 0.0.40
codegen_flags: <defaults>
</compile_context>

<pallas_src>
from math import sqrt
from typing import NamedTuple

import jax
import jax.numpy as jnp
from jax.experimental import pallas as pl
from jax.experimental.pallas import tpu as pltpu


def _round_up(a, b):
    return (a + b - 1) // b * b


# ---------------------------------------------------------------------------
# Kernels
# ---------------------------------------------------------------------------

def _swiglu_kernel_inplace(x_ref, wg_ref, wh_ref, wo_ref, o_ref):
    """f32 output: accumulate straight into the VMEM-resident output tile."""
    k = pl.program_id(1)
    x = x_ref[...]
    gate = jnp.dot(x, wg_ref[...], preferred_element_type=jnp.float32)
    hidden = jnp.dot(x, wh_ref[...], preferred_element_type=jnp.float32)
    # SiLU(gate) * hidden in f32 (VPU + EUP); single downcast before the MXU.
    act = (gate * jax.nn.sigmoid(gate) * hidden).astype(wo_ref.dtype)
    contrib = jnp.dot(act, wo_ref[...], preferred_element_type=jnp.float32)

    @pl.when(k == 0)
    def _():
        o_ref[...] = contrib

    @pl.when(k > 0)
    def _():
        o_ref[...] = o_ref[...] + contrib


def _swiglu_kernel_single_k(x_ref, wg_ref, wh_ref, wo_ref, o_ref):
    """Hidden axis collapsed to one k step; any output dtype, no scratch."""
    x = x_ref[...]
    gate = jnp.dot(x, wg_ref[...], preferred_element_type=jnp.float32)
    hidden = jnp.dot(x, wh_ref[...], preferred_element_type=jnp.float32)
    act = (gate * jax.nn.sigmoid(gate) * hidden).astype(wo_ref.dtype)
    out = jnp.dot(act, wo_ref[...], preferred_element_type=jnp.float32)
    o_ref[...] = out.astype(o_ref.dtype)


def _swiglu_kernel_scratch(x_ref, wg_ref, wh_ref, wo_ref, o_ref, acc_ref):
    """Non-f32 output with a multi-step hidden reduction: f32 scratch accumulator."""
    k = pl.program_id(1)

    @pl.when(k == 0)
    def _():
        acc_ref[...] = jnp.zeros_like(acc_ref)

    x = x_ref[...]
    gate = jnp.dot(x, wg_ref[...], preferred_element_type=jnp.float32)
    hidden = jnp.dot(x, wh_ref[...], preferred_element_type=jnp.float32)
    act = (gate * jax.nn.sigmoid(gate) * hidden).astype(wo_ref.dtype)
    acc_ref[...] += jnp.dot(act, wo_ref[...], preferred_element_type=jnp.float32)

    @pl.when(k == pl.num_programs(1) - 1)
    def _():
        o_ref[...] = acc_ref[...].astype(o_ref.dtype)


# ---------------------------------------------------------------------------
# Hoisted (one-time) weight preparation
# ---------------------------------------------------------------------------

class SwiGLUWeights(NamedTuple):
    wg_t: jax.Array   # (d_model_p, hidden_p), pre-transposed, padded, compute dtype
    wh_t: jax.Array   # (d_model_p, hidden_p)
    wo_t: jax.Array   # (hidden_p, d_model_p)


def prepare_swiglu_weights(wg, wh, wo, *, compute_dtype=None):
    """One-time weight prep: transpose, zero-pad to lane-dense shapes, cast.

    Do this once (e.g. at model init / parameter load) and reuse the result;
    it removes all per-call HBM traffic for weight reshaping/casting.
    Zero padding is an exact no-op for SwiGLU.
    """
    hidden, d_model = wg.shape
    assert wh.shape == (hidden, d_model)
    assert wo.shape == (d_model, hidden)
    cdt = jnp.dtype(compute_dtype) if compute_dtype is not None else jnp.dtype(wg.dtype)

    d_model_p = _round_up(d_model, 128)
    hidden_p = _round_up(hidden, 128)
    pad_d = d_model_p - d_model
    pad_h = hidden_p - hidden

    wg_t = jnp.pad(wg.T, ((0, pad_d), (0, pad_h))).astype(cdt)
    wh_t = jnp.pad(wh.T, ((0, pad_d), (0, pad_h))).astype(cdt)
    wo_t = jnp.pad(wo.T, ((0, pad_h), (0, pad_d))).astype(cdt)
    return SwiGLUWeights(wg_t=wg_t, wh_t=wh_t, wo_t=wo_t)


# ---------------------------------------------------------------------------
# Tile selection / VMEM budgeting
# ---------------------------------------------------------------------------

_TM_CANDIDATES = (1024, 768, 512, 384, 256, 128)


def _tpu_vmem_capacity_bytes():
    try:
        return int(pltpu.get_tpu_info().vmem_capacity_bytes)
    except Exception:
        pass
    try:
        kind = jax.devices()[0].device_kind.lower()
    except Exception:
        kind = ""
    # 128 MiB parts: v4/v5e/v5p/v6e. Otherwise be conservative (v7x: 64 MiB/TC).
    if any(tag in kind for tag in ("v6", "v5", "v4")):
        return 128 << 20
    return 64 << 20


def _vmem_bytes(tm, tk, d_model_p, itm, out_itm, use_scratch):
    est = 2 * tm * d_model_p * itm           # x tile (double-buffered)
    est += 2 * 2 * d_model_p * tk * itm      # Wg^T, Wh^T slices (double-buffered)
    est += 2 * tk * d_model_p * itm          # Wo^T slice
    est += 2 * tm * d_model_p * out_itm      # output tile
    if use_scratch:
        est += tm * d_model_p * 4            # f32 accumulator scratch
    est += 4 * tm * tk * 4                   # gate/hidden/product/act f32 temporaries
    return est


def _pick_tm(m, tm_max, prefer_two_tiles):
    m_aligned = _round_up(m, 16)
    if m_aligned <= 128:
        return m_aligned                     # tiny batch: one small exact tile
    for c in (c for c in _TM_CANDIDATES if c <= tm_max):
        m_p = _round_up(m, c)
        if prefer_two_tiles and m_aligned > 256 and m_p // c < 2:
            continue                         # keep both v7x TensorCores fed
        if (m_p - m) / m_p <= 0.10:          # bound MXU padding waste
            return c
    # Awkward token count: a single exactly-sized tile avoids padding entirely.
    if m_aligned <= tm_max and not (prefer_two_tiles and m_aligned > 256):
        return m_aligned
    return 128


def _select_tiles(m, d_model_p, hidden_p, itm, out_itm, out_is_f32, vmem_cap):
    big_vmem = vmem_cap >= (96 << 20)
    # Scoped-VMEM cap with headroom for Mosaic internal scratch / pipelining:
    # ~100 MiB on 128 MiB parts (v5e/v6e), ~44 MiB on 64 MiB parts (v7x).
    cap = max(min(vmem_cap - (20 << 20), 100 << 20), 28 << 20)
    tm_max = 1024 if big_vmem else 512
    prefer_two = not big_vmem

    tm0 = _pick_tm(m, tm_max, prefer_two)
    tm_list = [tm0] + [c for c in _TM_CANDIDATES if c < tm0]
    # Prefer collapsing the hidden axis (weights DMA'd exactly once), then the
    # largest tk that fits the VMEM budget.
    tk_list = [hidden_p] + [c for c in (2048, 1024, 512, 256, 128)
                            if c < hidden_p and hidden_p % c == 0]

    for tm in tm_list:
        for tk in tk_list:
            n_k = hidden_p // tk
            use_scratch = (not out_is_f32) and n_k > 1
            est = _vmem_bytes(tm, tk, d_model_p, itm, out_itm, use_scratch)
            if est + (4 << 20) <= cap:
                return tm, tk, est, cap

    # Last resort: smallest tiles.
    tm = min(tm_list)
    tk = tk_list[-1]
    use_scratch = (not out_is_f32) and (hidden_p // tk) > 1
    est = _vmem_bytes(tm, tk, d_model_p, itm, out_itm, use_scratch)
    return tm, tk, est, cap


# ---------------------------------------------------------------------------
# Forward call
# ---------------------------------------------------------------------------

def swiglu_pallas(x, weights: SwiGLUWeights, *, tm=None, tk=None):
    """SwiGLU forward with hoisted weight prep.

    x:       (..., d_model), any float dtype (output keeps x.dtype).
    weights: result of prepare_swiglu_weights(); compute dtype = weights dtype,
             MXU accumulation is always f32.
    """
    wg_t, wh_t, wo_t = weights.wg_t, weights.wh_t, weights.wo_t
    d_model = x.shape[-1]
    out_dtype = jnp.dtype(x.dtype)
    d_model_p, hidden_p = wg_t.shape
    assert _round_up(d_model, 128) == d_model_p, "weights prepared for a different d_model"

    cdt = jnp.dtype(wg_t.dtype)
    itm = cdt.itemsize
    out_itm = out_dtype.itemsize
    out_is_f32 = out_dtype == jnp.float32

    x2d = x.reshape(-1, d_model)
    m = x2d.shape[0]

    vmem_cap = _tpu_vmem_capacity_bytes()
    tm_a, tk_a, vmem_est, cap = _select_tiles(
        m, d_model_p, hidden_p, itm, out_itm, out_is_f32, vmem_cap)
    tm = tm_a if tm is None else tm
    tk = tk_a if tk is None else tk
    assert hidden_p % tk == 0, "tk must divide the padded hidden dim"

    m_p = _round_up(m, tm)
    if (m_p, d_model_p) != (m, d_model):
        x2d = jnp.pad(x2d, ((0, m_p - m), (0, d_model_p - d_model)))
    if x2d.dtype != cdt:
        x2d = x2d.astype(cdt)

    n_i = m_p // tm
    n_k = hidden_p // tk
    grid = (n_i, n_k)

    vmem_limit = int(min(max(vmem_est + (8 << 20), 32 << 20), cap))

    weight_bytes = 3 * d_model_p * hidden_p * itm
    weight_reads = 1 if n_k == 1 else n_i      # constant block index -> fetched once
    cost = pl.CostEstimate(
        flops=int(6 * m_p * d_model_p * hidden_p),
        transcendentals=int(m_p * hidden_p),
        bytes_accessed=int(m_p * d_model_p * (itm + out_itm)
                           + weight_reads * weight_bytes),
    )

    in_specs = [
        pl.BlockSpec((tm, d_model_p), lambda i, k: (i, 0)),   # x tile
        pl.BlockSpec((d_model_p, tk), lambda i, k: (0, k)),   # Wg^T slice
        pl.BlockSpec((d_model_p, tk), lambda i, k: (0, k)),   # Wh^T slice
        pl.BlockSpec((tk, d_model_p), lambda i, k: (k, 0)),   # Wo^T slice
    ]
    out_spec = pl.BlockSpec((tm, d_model_p), lambda i, k: (i, 0))

    if out_is_f32:
        kernel = _swiglu_kernel_inplace       # accumulate directly into o_ref
        scratch_shapes = []
    elif n_k == 1:
        kernel = _swiglu_kernel_single_k
        scratch_shapes = []
    else:
        kernel = _swiglu_kernel_scratch
        scratch_shapes = [pltpu.VMEM((tm, d_model_p), jnp.float32)]

    out2d = pl.pallas_call(
        kernel,
        out_shape=jax.ShapeDtypeStruct((m_p, d_model_p), out_dtype),
        grid_spec=pltpu.PrefetchScalarGridSpec(
            num_scalar_prefetch=0,
            grid=grid,
            in_specs=in_specs,
            out_specs=out_spec,
            scratch_shapes=scratch_shapes,
        ),
        compiler_params=pltpu.CompilerParams(
            dimension_semantics=("parallel", "arbitrary"),
            vmem_limit_bytes=vmem_limit,
        ),
        cost_estimate=cost,
    )(x2d, wg_t, wh_t, wo_t)

    return out2d[:m, :d_model].reshape(x.shape)


def swiglu(x, wg, wh, wo, *, compute_dtype=None):
    """Convenience wrapper for raw PyTorch-convention weights.

    NOTE: for real use call prepare_swiglu_weights() once and reuse it;
    this wrapper re-prepares the weights on every call.
    """
    return swiglu_pallas(x, prepare_swiglu_weights(wg, wh, wo, compute_dtype=compute_dtype))


# ---------------------------------------------------------------------------
# Reference + init (mirrors the PyTorch module)
# ---------------------------------------------------------------------------

def init_swiglu_params(key, d_model, hidden_dim=None, dtype=jnp.float32):
    """Deterministic init mirroring nn.Linear default (uniform +-1/sqrt(fan_in))."""
    if hidden_dim is None:
        hidden_dim = 4 * d_model
    k1, k2, k3 = jax.random.split(key, 3)
    bound_in = 1.0 / sqrt(d_model)
    bound_h = 1.0 / sqrt(hidden_dim)
    # PyTorch stores (out_features, in_features); prep transposes once.
    wg = jax.random.uniform(k1, (hidden_dim, d_model), dtype, -bound_in, bound_in)
    wh = jax.random.uniform(k2, (hidden_dim, d_model), dtype, -bound_in, bound_in)
    wo = jax.random.uniform(k3, (d_model, hidden_dim), dtype, -bound_h, bound_h)
    return wg, wh, wo


def swiglu_reference(x, wg, wh, wo):
    """Pure-JAX reference matching the PyTorch module."""
    gate = x @ wg.T
    hidden = x @ wh.T
    return (jax.nn.silu(gate) * hidden) @ wo.T


if __name__ == "__main__":
    key = jax.random.PRNGKey(0)
    k_x, k_w = jax.random.split(key)

    batch, seq, d_model = 2, 8, 128          # hidden = 4 * d_model = 512
    x = jax.random.normal(k_x, (batch, seq, d_model), dtype=jnp.float32)
    wg, wh, wo = init_swiglu_params(k_w, d_model)

    ref = swiglu_reference(x, wg, wh, wo)

    # Hoisted (one-time) weight prep; f32 compute path.
    w_f32 = prepare_swiglu_weights(wg, wh, wo)
    out = jax.block_until_ready(swiglu_pallas(x, w_f32))
    assert out.shape == (batch, seq, d_model)
    assert out.dtype == x.dtype
    assert jnp.allclose(out, ref, atol=5e-3, rtol=5e-3), "f32 mismatch vs reference"

    # bf16 MXU path (weights cast once at prep time, f32 accumulation).
    w_bf16 = prepare_swiglu_weights(wg, wh, wo, compute_dtype=jnp.bfloat16)
    out_bf16 = jax.block_until_ready(swiglu_pallas(x, w_bf16))
    assert jnp.allclose(out_bf16, ref, atol=1e-1, rtol=1e-1), "bf16 mismatch vs reference"

    print("KERNEL_OK")
</pallas_src>

<mosaic_0001>
module attributes {stable_mosaic.version = 11 : i64} {
  func.func @_swiglu_kernel_inplace(%arg0: i32, %arg1: i32, %arg2: memref<16x128xf32, #tpu.memory_space<vmem>>, %arg3: memref<128x512xf32, #tpu.memory_space<vmem>>, %arg4: memref<128x512xf32, #tpu.memory_space<vmem>>, %arg5: memref<512x128xf32, #tpu.memory_space<vmem>>, %arg6: memref<16x128xf32, #tpu.memory_space<vmem>>) attributes {dimension_semantics = [#tpu.dimension_semantics<parallel>, #tpu.dimension_semantics<arbitrary>], iteration_bounds = array<i64: 1, 1>, scalar_prefetch = 0 : i64, scratch_operands = 0 : i64, tpu.core_type = #tpu.core_type<tc>, window_params = [{transform_indices = @transform_0, window_bounds = array<i64: 16, 128>}, {transform_indices = @transform_1, window_bounds = array<i64: 128, 512>}, {transform_indices = @transform_2, window_bounds = array<i64: 128, 512>}, {transform_indices = @transform_3, window_bounds = array<i64: 512, 128>}, {transform_indices = @transform_4, window_bounds = array<i64: 16, 128>}]} {
    %c0 = arith.constant 0 : index
    %c0_0 = arith.constant 0 : index
    %0 = vector.load %arg2[%c0, %c0_0] : memref<16x128xf32, #tpu.memory_space<vmem>>, vector<16x128xf32>
    %c0_1 = arith.constant 0 : index
    %c0_2 = arith.constant 0 : index
    %1 = vector.load %arg3[%c0_1, %c0_2] : memref<128x512xf32, #tpu.memory_space<vmem>>, vector<128x512xf32>
    %cst = arith.constant dense<0.000000e+00> : vector<16x512xf32>
    %2 = tpu.matmul %0, %1, %cst {dimension_numbers = #tpu.dot_dimension_numbers<[1], [0], [0], [1], [0, 0, 1, 1], [], []>} : vector<16x128xf32>, vector<128x512xf32>, vector<16x512xf32> -> vector<16x512xf32>
    %c0_3 = arith.constant 0 : index
    %c0_4 = arith.constant 0 : index
    %3 = vector.load %arg4[%c0_3, %c0_4] : memref<128x512xf32, #tpu.memory_space<vmem>>, vector<128x512xf32>
    %cst_5 = arith.constant dense<0.000000e+00> : vector<16x512xf32>
    %4 = tpu.matmul %0, %3, %cst_5 {dimension_numbers = #tpu.dot_dimension_numbers<[1], [0], [0], [1], [0, 0, 1, 1], [], []>} : vector<16x128xf32>, vector<128x512xf32>, vector<16x512xf32> -> vector<16x512xf32>
    %5 = arith.negf %2 : vector<16x512xf32>
    %6 = math.exp %5 : vector<16x512xf32>
    %cst_6 = arith.constant 1.000000e+00 : f32
    %7 = vector.broadcast %cst_6 : f32 to vector<16x512xf32>
    %8 = arith.addf %7, %6 : vector<16x512xf32>
    %9 = arith.divf %7, %8 : vector<16x512xf32>
    %10 = arith.mulf %2, %9 : vector<16x512xf32>
    %11 = arith.mulf %10, %4 : vector<16x512xf32>
    %c0_7 = arith.constant 0 : index
    %c0_8 = arith.constant 0 : index
    %12 = vector.load %arg5[%c0_7, %c0_8] : memref<512x128xf32, #tpu.memory_space<vmem>>, vector<512x128xf32>
    %cst_9 = arith.constant dense<0.000000e+00> : vector<16x128xf32>
    %13 = tpu.matmul %11, %12, %cst_9 {dimension_numbers = #tpu.dot_dimension_numbers<[1], [0], [0], [1], [0, 0, 1, 1], [], []>} : vector<16x512xf32>, vector<512x128xf32>, vector<16x128xf32> -> vector<16x128xf32>
    %c0_i32 = arith.constant 0 : i32
    %14 = arith.cmpi eq, %arg1, %c0_i32 : i32
    %15 = arith.extui %14 : i1 to i32
    %c0_i32_10 = arith.constant 0 : i32
    %16 = arith.cmpi ne, %15, %c0_i32_10 : i32
    scf.if %16 {
      %c0_13 = arith.constant 0 : index
      %c0_14 = arith.constant 0 : index
      %20 = vector.load %arg6[%c0_13, %c0_14] : memref<16x128xf32, #tpu.memory_space<vmem>>, vector<16x128xf32>
      tpu.vector_store %arg6[%c0_13, %c0_14], %13 {strides = array<i32>} : memref<16x128xf32, #tpu.memory_space<vmem>>, vector<16x128xf32>,
    } else {
    }
    %c0_i32_11 = arith.constant 0 : i32
    %17 = arith.cmpi sgt, %arg1, %c0_i32_11 : i32
    %18 = arith.extui %17 : i1 to i32
    %c0_i32_12 = arith.constant 0 : i32
    %19 = arith.cmpi ne, %18, %c0_i32_12 : i32
    scf.if %19 {
      %c0_13 = arith.constant 0 : index
      %c0_14 = arith.constant 0 : index
      %20 = vector.load %arg6[%c0_13, %c0_14] : memref<16x128xf32, #tpu.memory_space<vmem>>, vector<16x128xf32>
      %21 = arith.addf %20, %13 : vector<16x128xf32>
      %c0_15 = arith.constant 0 : index
      %c0_16 = arith.constant 0 : index
      %22 = vector.load %arg6[%c0_15, %c0_16] : memref<16x128xf32, #tpu.memory_space<vmem>>, vector<16x128xf32>
      tpu.vector_store %arg6[%c0_15, %c0_16], %21 {strides = array<i32>} : memref<16x128xf32, #tpu.memory_space<vmem>>, vector<16x128xf32>,
    } else {
    }
    return
  }
  func.func @transform_0(%arg0: i32, %arg1: i32) -> (i32, i32) {
    %c0_i32 = arith.constant 0 : i32
    %c0_i32_0 = arith.constant 0 : i32
    return %arg0, %c0_i32 : i32, i32
  }
  func.func @transform_1(%arg0: i32, %arg1: i32) -> (i32, i32) {
    %c0_i32 = arith.constant 0 : i32
    %c0_i32_0 = arith.constant 0 : i32
    return %c0_i32, %arg1 : i32, i32
  }
  func.func @transform_2(%arg0: i32, %arg1: i32) -> (i32, i32) {
    %c0_i32 = arith.constant 0 : i32
    %c0_i32_0 = arith.constant 0 : i32
    return %c0_i32, %arg1 : i32, i32
  }
  func.func @transform_3(%arg0: i32, %arg1: i32) -> (i32, i32) {
    %c0_i32 = arith.constant 0 : i32
    %c0_i32_0 = arith.constant 0 : i32
    return %arg1, %c0_i32 : i32, i32
  }
  func.func @transform_4(%arg0: i32, %arg1: i32) -> (i32, i32) {
    %c0_i32 = arith.constant 0 : i32
    %c0_i32_0 = arith.constant 0 : i32
    return %arg0, %c0_i32 : i32, i32
  }
}

</mosaic_0001>

<bundles_post_ra>
// kernel: tpu_custom_call.1
= control target key start
LH: loop header
LB: loop body
LE: loop exit
PB: predicated region body
PF: predicated region fallthrough
CT: control target
= control target key end

     0   :  { %9 = vsyncpa [#allocation3], 0  ;;  %s1397_s0 = inlined_call_operand.hbm [shape: f32[16,128], index: 0, kind: input, shape index: {}]   ;;  %s1398_s1 = inlined_call_operand.hbm [shape: f32[128,512], index: 1, kind: input, shape index: {}]   ;;  %s1399_s2 = inlined_call_operand.hbm [shape: f32[128,512], index: 2, kind: input, shape index: {}]   ;;  %s1400_s3 = inlined_call_operand.hbm [shape: f32[512,128], index: 3, kind: input, shape index: {}]   ;;  %s1401_s4 = inlined_call_operand.hbm [shape: f32[16,128], index: 4, kind: output, shape index: {}]  }
   0x1   :  { %10 = vsyncpa [#allocation6], 0 }
   0x2   :  { %11 = vsyncpa [#allocation9], 0 }
   0x3   :  { %12 = vsyncpa [#allocation4], 0  ;;  %s1260_s15 = smov [#allocation5]   ;;  %s1142_s19 = scalar_lea.hbm %s1398_s1, 8192 }
   0x4   :  { %s30_s16 = sshll.u32 %s1260_s15, 4  ;;  %p1143_p0 = scmp.ne.s32.totalorder %s1398_s1, %s1142_s19  ;;  %s31_s16 = int_to_ptr.vmem [resolvable:$true] %s30_s16 }
   0x5   :  { %p1146_p1 = scmp.lt.u32.totalorder %s1142_s19, %s1398_s1 }
   0x7   :  { %p1148_p2 = pnand %p1146_p1, %p1143_p0 }
   0x9   :  { %1151 = shalt.err (!%p1148_p2)
}
   0xa   :  { %s1152_s24 = scalar_lea.vmem %s31_s16, 8192  ;;  %p1157_p4 = scmp.lt.s32.totalorder %s31_s16, %s31_s16 }
   0xb   :  { %p1153_p3 = scmp.ne.s32.totalorder %s31_s16, %s1152_s24  ;;  %p1158_p5 = scmp.lt.s32.totalorder %s1152_s24, %s1152_s24 }
   0xd   :  { %p1159_p6 = por %p1158_p5, %p1157_p4 }
   0xf   :  { %p1160_p7 = pnand %p1159_p6, %p1153_p3 }
  0x11   :  { %1163 = shalt.err (!%p1160_p7)
}
  0x12   :  { %s1261_s25 = smov 512   ;;  %s1262_s26 = smov 32  }
  0x13   :  { %36 = dma.hbm_to_vmem [thread:$0]  %s1398_s1, 8192, %s31_s16, [#allocation6], %s1261_s25, %s1261_s25, %s1262_s26  }
  0x14   :  { %s1263_s29 = smov [#allocation2]   ;;  %s1164_s7 = scalar_lea.hbm %s1397_s0, 256 }
  0x15   :  { %s18_s30 = sshll.u32 %s1263_s29, 4  ;;  %p1165_p8 = scmp.ne.s32.totalorder %s1397_s0, %s1164_s7  ;;  %s19_s30 = int_to_ptr.vmem [resolvable:$true] %s18_s30 }
  0x16   :  { %p1168_p9 = scmp.lt.u32.totalorder %s1164_s7, %s1397_s0 }
  0x18   :  { %p1170_p10 = pnand %p1168_p9, %p1165_p8 }
  0x1a   :  { %1173 = shalt.err (!%p1170_p10)
}
  0x1b   :  { %s1174_s12 = scalar_lea.vmem %s19_s30, 256  ;;  %p1179_p12 = scmp.lt.s32.totalorder %s19_s30, %s19_s30 }
  0x1c   :  { %p1175_p11 = scmp.ne.s32.totalorder %s19_s30, %s1174_s12  ;;  %p1180_p13 = scmp.lt.s32.totalorder %s1174_s12, %s1174_s12 }
  0x1e   :  { %p1181_p0 = por %p1180_p13, %p1179_p12 }
  0x20   :  { %p1182_p1 = pnand %p1181_p0, %p1175_p11 }
  0x22   :  { %1185 = shalt.err (!%p1182_p1)
}
  0x23   :  { %s1264_s1 = smov 128   ;;  %s1265_s13 = smov 8  }
  0x24   :  { %24 = dma.hbm_to_vmem [thread:$0]  %s1397_s0, 256, %s19_s30, [#allocation3], %s1264_s1, %s1264_s1, %s1265_s13  }
  0x25   :  { %s1266_s16 = smov [#allocation7]   ;;  %s1267_s18 = smov [#allocation8]  }
  0x26   :  { %s42_s17 = sshll.u32 %s1266_s16, 4  ;;  %s54_s19 = sshll.u32 %s1267_s18, 4  ;;  %s43_s17 = int_to_ptr.vmem [resolvable:$true] %s42_s17  ;;  %s1325_s19 = int_to_ptr.vmem [resolvable:$true] %s54_s19 }
  0x27   :  { %s1186_s22 = scalar_lea.hbm %s1399_s2, 8192 }
  0x28   :  { %p1187_p2 = scmp.ne.s32.totalorder %s1399_s2, %s1186_s22  ;;  %p1190_p3 = scmp.lt.u32.totalorder %s1186_s22, %s1399_s2 }
  0x2a   :  { %p1192_p4 = pnand %p1190_p3, %p1187_p2 }
  0x2c   :  { %1195 = shalt.err (!%p1192_p4)
}
  0x2d   :  { %s1196_s0 = scalar_lea.vmem %s43_s17, 8192  ;;  %p1201_p6 = scmp.lt.s32.totalorder %s43_s17, %s43_s17 }
  0x2e   :  { %p1197_p5 = scmp.ne.s32.totalorder %s43_s17, %s1196_s0  ;;  %p1202_p7 = scmp.lt.s32.totalorder %s1196_s0, %s1196_s0 }
  0x30   :  { %p1203_p8 = por %p1202_p7, %p1201_p6 }
  0x32   :  { %p1204_p9 = pnand %p1203_p8, %p1197_p5 }
  0x34   :  { %1207 = shalt.err (!%p1204_p9)
}
  0x35   :  { %48 = dma.hbm_to_vmem [thread:$0]  %s1399_s2, 8192, %s43_s17, [#allocation6], %s1261_s25, %s1261_s25, %s1262_s26  }
  0x36   :  { %s1208_s7 = scalar_lea.hbm %s1400_s3, 8192 }
  0x37   :  { %p1209_p10 = scmp.ne.s32.totalorder %s1400_s3, %s1208_s7  ;;  %p1212_p11 = scmp.lt.u32.totalorder %s1208_s7, %s1400_s3 }
  0x39   :  { %p1214_p12 = pnand %p1212_p11, %p1209_p10 }
  0x3b   :  { %1217 = shalt.err (!%p1214_p12)
}
  0x3c   :  { %s1218_s12 = scalar_lea.vmem %s1325_s19, 8192  ;;  %p1223_p0 = scmp.lt.s32.totalorder %s1325_s19, %s1325_s19 }
  0x3d   :  { %p1219_p13 = scmp.ne.s32.totalorder %s1325_s19, %s1218_s12  ;;  %p1224_p1 = scmp.lt.s32.totalorder %s1218_s12, %s1218_s12 }
  0x3f   :  { %p1225_p2 = por %p1224_p1, %p1223_p0 }
  0x41   :  { %p1226_p3 = pnand %p1225_p2, %p1219_p13 }
  0x43   :  { %1229 = shalt.err (!%p1226_p3)
}
  0x44   :  { %60 = dma.hbm_to_vmem [thread:$0]  %s1400_s3, 8192, %s1325_s19, [#allocation9], %s1264_s1, %s1264_s1, %s1265_s13  }
  0x45   :  { %1252 = dma.done.wait [#allocation3], 256  }
  0x46   :  { %1253 = vsyncadd [#allocation3], 4294967040 }
  0x47   :  { %1254 = dma.done.wait [#allocation6], 16384  }
  0x48   :  { %1255 = vsyncadd [#allocation6], 4294950912 }
  0x49   :  { %1256 = dma.done.wait [#allocation9], 8192  }
  0x4a   :  { %1257 = vsyncadd [#allocation9], 4294959104  ;;  %v1268_v0 = vmov 0.0   ;;  %v76_v1 = vld [vmem:[#allocation5 + $0x8] sm:$0xff]  ;;  %v78_v3 = vld [vmem:[#allocation5 + $0x18] sm:$0xff]  ;;  %s1269_s3 = smov [#allocation10]  }
  0x4b   :  { %203 = vmatprep.mubr.f32.mxu0 %v1268_v0  ;;  %280 = vmatprep.mubr.f32.mxu1 %v1268_v0  ;;  %v80_v2 = vld [vmem:[#allocation5 + $0x28] sm:$0xff]  ;;  %v82_v5 = vld [vmem:[#allocation5 + $0x38] sm:$0xff]  ;;  %v75_v6 = vld [vmem:[#allocation5] sm:$0xff]  ;;  %s810_s26 = sshll.u32 %s1269_s3, 4  ;;  %s811_s26 = int_to_ptr.vmem [resolvable:$true] %s810_s26 }
  0x4c   :  { %v908_v4 = vpack.c.bf16 %v80_v2, %v76_v1  ;;  %v79_v7 = vld [vmem:[#allocation5 + $0x20] sm:$0xff]  ;;  %v940_v8 = vpack.c.bf16 %v82_v5, %v78_v3  ;;  %v77_v10 = vld [vmem:[#allocation5 + $0x10] sm:$0xff]  ;;  %v84_v12 = vld [vmem:[#allocation5 + $0x48] sm:$0xff]  ;;  %s1230_s14 = scalar_lea.vmem %s811_s26, 256  ;;  %p1235_p5 = scmp.lt.s32.totalorder %s811_s26, %s811_s26 }
  0x4d   :  { %v910_v9 = vpack.c.bf16 %v79_v7, %v75_v6  ;;  %v81_v11 = vld [vmem:[#allocation5 + $0x30] sm:$0xff]  ;;  %v88_v14 = vld [vmem:[#allocation5 + $0x68] sm:$0xff]  ;;  %v86_v15 = vld [vmem:[#allocation5 + $0x58] sm:$0xff]  ;;  %p1231_p4 = scmp.ne.s32.totalorder %s811_s26, %s1230_s14  ;;  %p1236_p6 = scmp.lt.s32.totalorder %s1230_s14, %s1230_s14 }
  0x4e   :  { %909 = vmatprep.subr.bf16.mxu0 %v908_v4  ;;  %v942_v13 = vpack.c.bf16 %v81_v11, %v77_v10  ;;  %v90_v16 = vld [vmem:[#allocation5 + $0x78] sm:$0xff]  ;;  %941 = vmatprep.subr.bf16.mxu1 %v940_v8  ;;  %v912_v17 = vpack.c.bf16 %v88_v14, %v84_v12  ;;  %v83_v19 = vld [vmem:[#allocation5 + $0x40] sm:$0xff]  ;;  %v85_v21 = vld [vmem:[#allocation5 + $0x50] sm:$0xff] }
  0x4f   :  { %911 = vmatpush1.bf16.msra.mxu0 %v910_v9  ;;  %v944_v18 = vpack.c.bf16 %v90_v16, %v86_v15  ;;  %v87_v20 = vld [vmem:[#allocation5 + $0x60] sm:$0xff]  ;;  %v89_v23 = vld [vmem:[#allocation5 + $0x70] sm:$0xff]  ;;  %v92_v24 = vld [vmem:[#allocation5 + $0x88] sm:$0xff]  ;;  %p1237_p7 = por %p1236_p6, %p1235_p5 }
  0x50   :  { %943 = vmatpush1.bf16.msra.mxu1 %v942_v13  ;;  %v914_v22 = vpack.c.bf16 %v87_v20, %v83_v19  ;;  %v96_v25 = vld [vmem:[#allocation5 + $0xa8] sm:$0xff]  ;;  %913 = vmatprep.subr.bf16.mxu0 %v912_v17  ;;  %v946_v26 = vpack.c.bf16 %v89_v23, %v85_v21  ;;  %v94_v28 = vld [vmem:[#allocation5 + $0x98] sm:$0xff]  ;;  %v91_v30 = vld [vmem:[#allocation5 + $0x80] sm:$0xff] }
  0x51   :  { %945 = vmatprep.subr.bf16.mxu1 %v944_v18  ;;  %v916_v27 = vpack.c.bf16 %v96_v25, %v92_v24  ;;  %v98_v29 = vld [vmem:[#allocation5 + $0xb8] sm:$0xff]  ;;  %v95_v32 = vld [vmem:[#allocation5 + $0xa0] sm:$0xff]  ;;  %v93_v33 = vld [vmem:[#allocation5 + $0x90] sm:$0xff]  ;;  %p1238_p8 = pnand %p1237_p7, %p1231_p4 }
  0x52   :  { %v948_v31 = vpack.c.bf16 %v98_v29, %v94_v28  ;;  %v97_v34 = vld [vmem:[#allocation5 + $0xb0] sm:$0xff]  ;;  %v918_v35 = vpack.c.bf16 %v95_v32, %v91_v30  ;;  %v100_v36 = vld [vmem:[#allocation5 + $0xc8] sm:$0xff]  ;;  %v102_v38 = vld [vmem:[#allocation5 + $0xd8] sm:$0xff] }
  0x53   :  { %915 = vmatpush1.bf16.msra.mxu0 %v914_v22  ;;  %v104_v37 = vld [vmem:[#allocation5 + $0xe8] sm:$0xff]  ;;  %v950_v39 = vpack.c.bf16 %v97_v34, %v93_v33  ;;  %v106_v41 = vld [vmem:[#allocation5 + $0xf8] sm:$0xff]  ;;  %v99_v42 = vld [vmem:[#allocation5 + $0xc0] sm:$0xff] }
  0x54   :  { %947 = vmatpush1.bf16.msra.mxu1 %v946_v26  ;;  %917 = vmatprep.subr.bf16.mxu0 %v916_v27  ;;  %v920_v40 = vpack.c.bf16 %v104_v37, %v100_v36  ;;  %v103_v43 = vld [vmem:[#allocation5 + $0xe0] sm:$0xff]  ;;  %v952_v44 = vpack.c.bf16 %v106_v41, %v102_v38  ;;  %v101_v45 = vld [vmem:[#allocation5 + $0xd0] sm:$0xff]  ;;  %v108_v47 = vld [vmem:[#allocation5 + $0x108] sm:$0xff] }
  0x55   :  { %949 = vmatprep.subr.bf16.mxu1 %v948_v31  ;;  %v105_v46 = vld [vmem:[#allocation5 + $0xf0] sm:$0xff]  ;;  %v112_v48 = vld [vmem:[#allocation5 + $0x128] sm:$0xff]  ;;  %v110_v49 = vld [vmem:[#allocation5 + $0x118] sm:$0xff]  ;;  %v922_v51 = vpack.c.bf16 %v103_v43, %v99_v42 }
  0x56   :  { %v114_v50 = vld [vmem:[#allocation5 + $0x138] sm:$0xff]  ;;  %v954_v52 = vpack.c.bf16 %v105_v46, %v101_v45  ;;  %v924_v53 = vpack.c.bf16 %v112_v48, %v108_v47  ;;  %v107_v54 = vld [vmem:[#allocation5 + $0x100] sm:$0xff]  ;;  %v109_v56 = vld [vmem:[#allocation5 + $0x110] sm:$0xff] }
  0x57   :  { %919 = vmatpush1.bf16.msra.mxu0 %v918_v35  ;;  %v111_v55 = vld [vmem:[#allocation5 + $0x120] sm:$0xff]  ;;  %v956_v57 = vpack.c.bf16 %v114_v50, %v110_v49  ;;  %v113_v58 = vld [vmem:[#allocation5 + $0x130] sm:$0xff]  ;;  %v116_v59 = vld [vmem:[#allocation5 + $0x148] sm:$0xff] }
  0x58   :  { %951 = vmatpush1.bf16.msra.mxu1 %v950_v39  ;;  %921 = vmatprep.subr.bf16.mxu0 %v920_v40  ;;  %v120_v60 = vld [vmem:[#allocation5 + $0x168] sm:$0xff]  ;;  %v118_v61 = vld [vmem:[#allocation5 + $0x158] sm:$0xff]  ;;  %v926_v63 = vpack.c.bf16 %v111_v55, %v107_v54  ;;  %v958_v1 = vpack.c.bf16 %v113_v58, %v109_v56  ;;  %v115_v3 = vld [vmem:[#allocation5 + $0x140] sm:$0xff] }
  0x59   :  { %953 = vmatprep.subr.bf16.mxu1 %v952_v44  ;;  %v122_v62 = vld [vmem:[#allocation5 + $0x178] sm:$0xff]  ;;  %v928_v2 = vpack.c.bf16 %v120_v60, %v116_v59  ;;  %v119_v4 = vld [vmem:[#allocation5 + $0x160] sm:$0xff]  ;;  %v117_v5 = vld [vmem:[#allocation5 + $0x150] sm:$0xff] }
  0x5a   :  { %v960_v6 = vpack.c.bf16 %v122_v62, %v118_v61  ;;  %v121_v7 = vld [vmem:[#allocation5 + $0x170] sm:$0xff]  ;;  %v124_v8 = vld [vmem:[#allocation5 + $0x188] sm:$0xff]  ;;  %v126_v10 = vld [vmem:[#allocation5 + $0x198] sm:$0xff]  ;;  %v930_v12 = vpack.c.bf16 %v119_v4, %v115_v3 }
  0x5b   :  { %923 = vmatpush1.bf16.msra.mxu0 %v922_v51  ;;  %v128_v9 = vld [vmem:[#allocation5 + $0x1a8] sm:$0xff]  ;;  %v130_v11 = vld [vmem:[#allocation5 + $0x1b8] sm:$0xff]  ;;  %v962_v13 = vpack.c.bf16 %v121_v7, %v117_v5  ;;  %v123_v15 = vld [vmem:[#allocation5 + $0x180] sm:$0xff] }
  0x5c   :  { %955 = vmatpush1.bf16.msra.mxu1 %v954_v52  ;;  %925 = vmatprep.subr.bf16.mxu0 %v924_v53  ;;  %v932_v14 = vpack.c.bf16 %v128_v9, %v124_v8  ;;  %v127_v16 = vld [vmem:[#allocation5 + $0x1a0] sm:$0xff]  ;;  %v125_v17 = vld [vmem:[#allocation5 + $0x190] sm:$0xff]  ;;  %v964_v18 = vpack.c.bf16 %v130_v11, %v126_v10  ;;  %v132_v20 = vld [vmem:[#allocation5 + $0x1c8] sm:$0xff] }
  0x5d   :  { %957 = vmatprep.subr.bf16.mxu1 %v956_v57  ;;  %v129_v19 = vld [vmem:[#allocation5 + $0x1b0] sm:$0xff]  ;;  %v136_v21 = vld [vmem:[#allocation5 + $0x1e8] sm:$0xff]  ;;  %v134_v22 = vld [vmem:[#allocation5 + $0x1d8] sm:$0xff]  ;;  %v934_v24 = vpack.c.bf16 %v127_v16, %v123_v15 }
  0x5e   :  { %v138_v23 = vld [vmem:[#allocation5 + $0x1f8] sm:$0xff]  ;;  %v966_v25 = vpack.c.bf16 %v129_v19, %v125_v17  ;;  %v936_v26 = vpack.c.bf16 %v136_v21, %v132_v20  ;;  %v131_v27 = vld [vmem:[#allocation5 + $0x1c0] sm:$0xff]  ;;  %v133_v29 = vld [vmem:[#allocation5 + $0x1d0] sm:$0xff] }
  0x5f   :  { %927 = vmatpush1.bf16.msra.mxu0 %v926_v63  ;;  %v135_v28 = vld [vmem:[#allocation5 + $0x1e0] sm:$0xff]  ;;  %v968_v30 = vpack.c.bf16 %v138_v23, %v134_v22  ;;  %v137_v31 = vld [vmem:[#allocation5 + $0x1f0] sm:$0xff]  ;;  %v294_v32 = vld [vmem:[#allocation7 + $0x8] sm:$0xff] }
  0x60   :  { %959 = vmatpush1.bf16.msra.mxu1 %v958_v1  ;;  %929 = vmatprep.subr.bf16.mxu0 %v928_v2  ;;  %v298_v33 = vld [vmem:[#allocation7 + $0x28] sm:$0xff]  ;;  %v296_v34 = vld [vmem:[#allocation7 + $0x18] sm:$0xff]  ;;  %v938_v36 = vpack.c.bf16 %v135_v28, %v131_v27  ;;  %v970_v37 = vpack.c.bf16 %v137_v31, %v133_v29  ;;  %v293_v39 = vld [vmem:[#allocation7] sm:$0xff] }
  0x61   :  { %961 = vmatprep.subr.bf16.mxu1 %v960_v6  ;;  %v300_v35 = vld [vmem:[#allocation7 + $0x38] sm:$0xff]  ;;  %v972_v38 = vpack.c.bf16 %v298_v33, %v294_v32  ;;  %v297_v40 = vld [vmem:[#allocation7 + $0x20] sm:$0xff]  ;;  %v295_v42 = vld [vmem:[#allocation7 + $0x10] sm:$0xff] }
  0x62   :  { %v1004_v41 = vpack.c.bf16 %v300_v35, %v296_v34  ;;  %v299_v43 = vld [vmem:[#allocation7 + $0x30] sm:$0xff]  ;;  %v302_v44 = vld [vmem:[#allocation7 + $0x48] sm:$0xff]  ;;  %v974_v47 = vpack.c.bf16 %v297_v40, %v293_v39  ;;  %v304_v48 = vld [vmem:[#allocation7 + $0x58] sm:$0xff] }
  0x63   :  { %931 = vmatpush1.bf16.msra.mxu0 %v930_v12  ;;  %v306_v45 = vld [vmem:[#allocation7 + $0x68] sm:$0xff]  ;;  %v1364_v46 = vld [vmem:[#allocation2] sm:$0xff]  ;;  %v308_v49 = vld [vmem:[#allocation7 + $0x78] sm:$0xff]  ;;  %v1006_v50 = vpack.c.bf16 %v299_v43, %v295_v42 }
  0x64   :  { %963 = vmatpush1.bf16.msra.mxu1 %v962_v13  ;;  %933 = vmatprep.subr.bf16.mxu0 %v932_v14  ;;  %v301_v51 = vld [vmem:[#allocation7 + $0x40] sm:$0xff]  ;;  %v303_v53 = vld [vmem:[#allocation7 + $0x50] sm:$0xff]  ;;  %v976_v54 = vpack.c.bf16 %v306_v45, %v302_v44  ;;  %v310_v56 = vld [vmem:[#allocation7 + $0x88] sm:$0xff]  ;;  %v1008_v58 = vpack.c.bf16 %v308_v49, %v304_v48 }
  0x65   :  { %965 = vmatprep.subr.bf16.mxu1 %v964_v18  ;;  %v305_v52 = vld [vmem:[#allocation7 + $0x60] sm:$0xff]  ;;  %v307_v55 = vld [vmem:[#allocation7 + $0x70] sm:$0xff]  ;;  %v314_v57 = vld [vmem:[#allocation7 + $0xa8] sm:$0xff] }
  0x66   :  { %v312_v59 = vld [vmem:[#allocation7 + $0x98] sm:$0xff]  ;;  %v978_v62 = vpack.c.bf16 %v305_v52, %v301_v51  ;;  %v1010_v63 = vpack.c.bf16 %v307_v55, %v303_v53  ;;  %v980_v1 = vpack.c.bf16 %v314_v57, %v310_v56  ;;  %v309_v2 = vld [vmem:[#allocation7 + $0x80] sm:$0xff]  ;;  %v311_v4 = vld [vmem:[#allocation7 + $0x90] sm:$0xff] }
  0x67   :  { %935 = vmatpush1.bf16.msra.mxu0 %v934_v24  ;;  %v316_v60 = vld [vmem:[#allocation7 + $0xb8] sm:$0xff]  ;;  %v313_v3 = vld [vmem:[#allocation7 + $0xa0] sm:$0xff]  ;;  %v315_v6 = vld [vmem:[#allocation7 + $0xb0] sm:$0xff] }
  0x68   :  { %967 = vmatpush1.bf16.msra.mxu1 %v966_v25  ;;  %937 = vmatprep.subr.bf16.mxu0 %v936_v26  ;;  %v1368_v61 = vld [vmem:[#allocation2 + $0x8] sm:$0xff]  ;;  %v1012_v5 = vpack.c.bf16 %v316_v60, %v312_v59  ;;  %v318_v7 = vld [vmem:[#allocation7 + $0xc8] sm:$0xff]  ;;  %v982_v11 = vpack.c.bf16 %v313_v3, %v309_v2  ;;  %v1014_v12 = vpack.c.bf16 %v315_v6, %v311_v4  ;;  %v317_v14 = vld [vmem:[#allocation7 + $0xc0] sm:$0xff] }
  0x69   :  { %969 = vmatprep.subr.bf16.mxu1 %v968_v30  ;;  %v322_v8 = vld [vmem:[#allocation7 + $0xe8] sm:$0xff]  ;;  %v320_v9 = vld [vmem:[#allocation7 + $0xd8] sm:$0xff]  ;;  %v321_v15 = vld [vmem:[#allocation7 + $0xe0] sm:$0xff] }
  0x6a   :  { %v324_v10 = vld [vmem:[#allocation7 + $0xf8] sm:$0xff]  ;;  %v984_v13 = vpack.c.bf16 %v322_v8, %v318_v7  ;;  %v319_v16 = vld [vmem:[#allocation7 + $0xd0] sm:$0xff]  ;;  %v326_v19 = vld [vmem:[#allocation7 + $0x108] sm:$0xff]  ;;  %v986_v23 = vpack.c.bf16 %v321_v15, %v317_v14 }
  0x6b   :  { %939 = vmatpush1.bf16.msra.mxu0 %v938_v36  ;;  %v1016_v17 = vpack.c.bf16 %v324_v10, %v320_v9  ;;  %v323_v18 = vld [vmem:[#allocation7 + $0xf0] sm:$0xff]  ;;  %v330_v20 = vld [vmem:[#allocation7 + $0x128] sm:$0xff]  ;;  %v328_v21 = vld [vmem:[#allocation7 + $0x118] sm:$0xff] }
  0x6c   :  { %971 = vmatpush1.bf16.msra.mxu1 %v970_v37  ;;  %973 = vmatprep.subr.bf16.mxu0 %v972_v38  ;;  %v332_v22 = vld [vmem:[#allocation7 + $0x138] sm:$0xff]  ;;  %v1018_v24 = vpack.c.bf16 %v323_v18, %v319_v16  ;;  %v988_v25 = vpack.c.bf16 %v330_v20, %v326_v19  ;;  %v325_v26 = vld [vmem:[#allocation7 + $0x100] sm:$0xff]  ;;  %v327_v28 = vld [vmem:[#allocation7 + $0x110] sm:$0xff] }
  0x6d   :  { %1005 = vmatprep.subr.bf16.mxu1 %v1004_v41  ;;  %v329_v27 = vld [vmem:[#allocation7 + $0x120] sm:$0xff]  ;;  %v1020_v29 = vpack.c.bf16 %v332_v22, %v328_v21  ;;  %v331_v30 = vld [vmem:[#allocation7 + $0x130] sm:$0xff]  ;;  %v334_v31 = vld [vmem:[#allocation7 + $0x148] sm:$0xff] }
  0x6e   :  { %204 = vmatmul.mubr.f32.vlgmr.msra.gmra.mrb[0].mxu0 %v1364_v46  ;;  %v338_v32 = vld [vmem:[#allocation7 + $0x168] sm:$0xff]  ;;  %v336_v33 = vld [vmem:[#allocation7 + $0x158] sm:$0xff]  ;;  %v990_v35 = vpack.c.bf16 %v329_v27, %v325_v26  ;;  %v1022_v36 = vpack.c.bf16 %v331_v30, %v327_v28  ;;  %v333_v38 = vld [vmem:[#allocation7 + $0x140] sm:$0xff] }
  0x6f   :  { %281 = vmatmul.mubr.f32.vlgmr.msra.gmra.mrb[0].mxu1 %v1364_v46  ;;  %975 = vmatpush1.bf16.msra.mxu0 %v974_v47  ;;  %v340_v34 = vld [vmem:[#allocation7 + $0x178] sm:$0xff]  ;;  %v992_v37 = vpack.c.bf16 %v338_v32, %v334_v31  ;;  %v337_v39 = vld [vmem:[#allocation7 + $0x160] sm:$0xff]  ;;  %v335_v40 = vld [vmem:[#allocation7 + $0x150] sm:$0xff] }
  0x70   :  { %1007 = vmatpush1.bf16.msra.mxu1 %v1006_v50  ;;  %209 = vmatprep.mubr.f32.mxu0 %v1268_v0  ;;  %v1024_v41 = vpack.c.bf16 %v340_v34, %v336_v33  ;;  %v339_v42 = vld [vmem:[#allocation7 + $0x170] sm:$0xff]  ;;  %v342_v43 = vld [vmem:[#allocation7 + $0x188] sm:$0xff]  ;;  %v344_v45 = vld [vmem:[#allocation7 + $0x198] sm:$0xff]  ;;  %v994_v48 = vpack.c.bf16 %v337_v39, %v333_v38 }
  0x71   :  { %286 = vmatprep.mubr.f32.mxu1 %v1268_v0  ;;  %977 = vmatprep.subr.bf16.mxu0 %v976_v54  ;;  %v346_v44 = vld [vmem:[#allocation7 + $0x1a8] sm:$0xff]  ;;  %v348_v47 = vld [vmem:[#allocation7 + $0x1b8] sm:$0xff]  ;;  %v1026_v49 = vpack.c.bf16 %v339_v42, %v335_v40  ;;  %v341_v51 = vld [vmem:[#allocation7 + $0x180] sm:$0xff] }
  0x72   :  { %210 = vmatmul.mubr.f32.gmra.mrb[2].mxu0 %v1368_v61  ;;  %1009 = vmatprep.subr.bf16.mxu1 %v1008_v58  ;;  %v996_v50 = vpack.c.bf16 %v346_v44, %v342_v43  ;;  %v345_v52 = vld [vmem:[#allocation7 + $0x1a0] sm:$0xff]  ;;  %v343_v53 = vld [vmem:[#allocation7 + $0x190] sm:$0xff]  ;;  %v1028_v54 = vpack.c.bf16 %v348_v47, %v344_v45  ;;  %v350_v56 = vld [vmem:[#allocation7 + $0x1c8] sm:$0xff] }
  0x73   :  { %287 = vmatmul.mubr.f32.gmra.mrb[2].mxu1 %v1368_v61  ;;  %979 = vmatpush1.bf16.msra.mxu0 %v978_v62  ;;  %v347_v55 = vld [vmem:[#allocation7 + $0x1b0] sm:$0xff]  ;;  %v354_v57 = vld [vmem:[#allocation7 + $0x1e8] sm:$0xff]  ;;  %v352_v58 = vld [vmem:[#allocation7 + $0x1d8] sm:$0xff]  ;;  %v998_v60 = vpack.c.bf16 %v345_v52, %v341_v51 }
  0x74   :  { %1011 = vmatpush1.bf16.msra.mxu1 %v1010_v63  ;;  %981 = vmatprep.subr.bf16.mxu0 %v980_v1  ;;  %v356_v59 = vld [vmem:[#allocation7 + $0x1f8] sm:$0xff]  ;;  %v1030_v62 = vpack.c.bf16 %v347_v55, %v343_v53  ;;  %v1000_v63 = vpack.c.bf16 %v354_v57, %v350_v56  ;;  %v349_v1 = vld [vmem:[#allocation7 + $0x1c0] sm:$0xff]  ;;  %v351_v4 = vld [vmem:[#allocation7 + $0x1d0] sm:$0xff] }
  0x75   :  { %1013 = vmatprep.subr.bf16.mxu1 %v1012_v5  ;;  %421 = vmatprep.mubr.f32.mxu0 %v1268_v0  ;;  %v353_v2 = vld [vmem:[#allocation7 + $0x1e0] sm:$0xff]  ;;  %v1032_v3 = vpack.c.bf16 %v356_v59, %v352_v58  ;;  %v355_v5 = vld [vmem:[#allocation7 + $0x1f0] sm:$0xff]  ;;  %v592_v9 = vld [vmem:[#allocation8 + $0x88] sm:$0xff] }
  0x76   :  { %498 = vmatprep.mubr.f32.mxu1 %v1268_v0  ;;  %v1002_v6 = vpack.c.bf16 %v353_v2, %v349_v1  ;;  %v1034_v7 = vpack.c.bf16 %v355_v5, %v351_v4  ;;  %v591_v8 = vld [vmem:[#allocation8 + $0x80] sm:$0xff]  ;;  %v576_v14 = vld [vmem:[#allocation8 + $0x8] sm:$0xff]  ;;  %v594_v19 = vld [vmem:[#allocation8 + $0x98] sm:$0xff] }
  0x77   :  { %983 = vmatpush1.bf16.msra.mxu0 %v982_v11  ;;  %v623_v10 = vld [vmem:[#allocation8 + $0x180] sm:$0xff]  ;;  %v1036_v11 = vpack.c.bf16 %v592_v9, %v591_v8  ;;  %v608_v18 = vld [vmem:[#allocation8 + $0x108] sm:$0xff]  ;;  %v625_v20 = vld [vmem:[#allocation8 + $0x190] sm:$0xff] }
  0x78   :  { %1015 = vmatpush1.bf16.msra.mxu1 %v1014_v12  ;;  %985 = vmatprep.subr.bf16.mxu0 %v984_v13  ;;  %v624_v12 = vld [vmem:[#allocation8 + $0x188] sm:$0xff]  ;;  %v575_v13 = vld [vmem:[#allocation8] sm:$0xff]  ;;  %v626_v21 = vld [vmem:[#allocation8 + $0x198] sm:$0xff] }
  0x79   :  { %1017 = vmatprep.subr.bf16.mxu1 %v1016_v17  ;;  %v1068_v15 = vpack.c.bf16 %v624_v12, %v623_v10  ;;  %v1038_v16 = vpack.c.bf16 %v576_v14, %v575_v13  ;;  %v607_v17 = vld [vmem:[#allocation8 + $0x100] sm:$0xff]  ;;  %v577_v22 = vld [vmem:[#allocation8 + $0x10] sm:$0xff]  ;;  %v610_v27 = vld [vmem:[#allocation8 + $0x118] sm:$0xff] }
  0x7a   :  { %v609_v26 = vld [vmem:[#allocation8 + $0x110] sm:$0xff]  ;;  %v596_v30 = vld [vmem:[#allocation8 + $0xa8] sm:$0xff]  ;;  %v627_v31 = vld [vmem:[#allocation8 + $0x1a0] sm:$0xff] }
  0x7b   :  { %987 = vmatpush1.bf16.msra.mxu0 %v986_v23  ;;  %v578_v23 = vld [vmem:[#allocation8 + $0x18] sm:$0xff]  ;;  %v1074_v28 = vpack.c.bf16 %v610_v27, %v609_v26  ;;  %v628_v33 = vld [vmem:[#allocation8 + $0x1a8] sm:$0xff]  ;;  %v579_v34 = vld [vmem:[#allocation8 + $0x20] sm:$0xff] }
  0x7c   :  { %1019 = vmatpush1.bf16.msra.mxu1 %v1018_v24  ;;  %989 = vmatprep.subr.bf16.mxu0 %v988_v25  ;;  %v1072_v24 = vpack.c.bf16 %v626_v21, %v625_v20  ;;  %v1042_v25 = vpack.c.bf16 %v578_v23, %v577_v22  ;;  %v611_v38 = vld [vmem:[#allocation8 + $0x120] sm:$0xff]  ;;  %v612_v39 = vld [vmem:[#allocation8 + $0x128] sm:$0xff]  ;;  %v598_v42 = vld [vmem:[#allocation8 + $0xb8] sm:$0xff] }
  0x7d   :  { %1021 = vmatprep.subr.bf16.mxu1 %v1020_v29  ;;  %v595_v29 = vld [vmem:[#allocation8 + $0xa0] sm:$0xff]  ;;  %v1078_v40 = vpack.c.bf16 %v612_v39, %v611_v38  ;;  %v629_v43 = vld [vmem:[#allocation8 + $0x1b0] sm:$0xff]  ;;  %v630_v45 = vld [vmem:[#allocation8 + $0x1b8] sm:$0xff] }
  0x7e   :  { %v1044_v32 = vpack.c.bf16 %v596_v30, %v595_v29  ;;  %v581_v47 = vld [vmem:[#allocation8 + $0x30] sm:$0xff]  ;;  %v614_v52 = vld [vmem:[#allocation8 + $0x138] sm:$0xff]  ;;  %v600_v55 = vld [vmem:[#allocation8 + $0xc8] sm:$0xff] }
  0x7f   :  { %991 = vmatpush1.bf16.msra.mxu0 %v990_v35  ;;  %v580_v35 = vld [vmem:[#allocation8 + $0x28] sm:$0xff]  ;;  %v613_v51 = vld [vmem:[#allocation8 + $0x130] sm:$0xff]  ;;  %v631_v56 = vld [vmem:[#allocation8 + $0x1c0] sm:$0xff] }
  0x80   :  { %1023 = vmatpush1.bf16.msra.mxu1 %v1022_v36  ;;  %993 = vmatprep.subr.bf16.mxu0 %v992_v37  ;;  %v1076_v36 = vpack.c.bf16 %v628_v33, %v627_v31  ;;  %v1046_v37 = vpack.c.bf16 %v580_v35, %v579_v34  ;;  %v1082_v53 = vpack.c.bf16 %v614_v52, %v613_v51  ;;  %v632_v58 = vld [vmem:[#allocation8 + $0x1c8] sm:$0xff]  ;;  %v583_v59 = vld [vmem:[#allocation8 + $0x40] sm:$0xff]  ;;  %v601_v4 = vld [vmem:[#allocation8 + $0xd0] sm:$0xff] }
  0x81   :  { %1025 = vmatprep.subr.bf16.mxu1 %v1024_v41  ;;  %v597_v41 = vld [vmem:[#allocation8 + $0xb0] sm:$0xff]  ;;  %v615_v1 = vld [vmem:[#allocation8 + $0x140] sm:$0xff]  ;;  %v616_v2 = vld [vmem:[#allocation8 + $0x148] sm:$0xff] }
  0x82   :  { %v1048_v44 = vpack.c.bf16 %v598_v42, %v597_v41  ;;  %v602_v5 = vld [vmem:[#allocation8 + $0xd8] sm:$0xff]  ;;  %v585_v9 = vld [vmem:[#allocation8 + $0x50] sm:$0xff]  ;;  %v588_v20 = vld [vmem:[#allocation8 + $0x68] sm:$0xff] }
  0x83   :  { %995 = vmatpush1.bf16.msra.mxu0 %v994_v48  ;;  %v582_v48 = vld [vmem:[#allocation8 + $0x38] sm:$0xff]  ;;  %v617_v13 = vld [vmem:[#allocation8 + $0x150] sm:$0xff]  ;;  %v619_v22 = vld [vmem:[#allocation8 + $0x160] sm:$0xff] }
  0x84   :  { %1027 = vmatpush1.bf16.msra.mxu1 %v1026_v49  ;;  %997 = vmatprep.subr.bf16.mxu0 %v996_v50  ;;  %v1080_v49 = vpack.c.bf16 %v630_v45, %v629_v43  ;;  %v1050_v50 = vpack.c.bf16 %v582_v48, %v581_v47  ;;  %v634_v8 = vld [vmem:[#allocation8 + $0x1d8] sm:$0xff]  ;;  %v620_v23 = vld [vmem:[#allocation8 + $0x168] sm:$0xff]  ;;  %v637_v27 = vld [vmem:[#allocation8 + $0x1f0] sm:$0xff] }
  0x85   :  { %1029 = vmatprep.subr.bf16.mxu1 %v1028_v54  ;;  %v599_v54 = vld [vmem:[#allocation8 + $0xc0] sm:$0xff]  ;;  %v586_v10 = vld [vmem:[#allocation8 + $0x58] sm:$0xff]  ;;  %v589_v30 = vld [vmem:[#allocation8 + $0x70] sm:$0xff] }
  0x86   :  { %v1052_v57 = vpack.c.bf16 %v600_v55, %v599_v54  ;;  %v1058_v12 = vpack.c.bf16 %v586_v10, %v585_v9  ;;  %v618_v14 = vld [vmem:[#allocation8 + $0x158] sm:$0xff]  ;;  %v621_v34 = vld [vmem:[#allocation8 + $0x170] sm:$0xff] }
  0x87   :  { %999 = vmatpush1.bf16.msra.mxu0 %v998_v60  ;;  %v584_v60 = vld [vmem:[#allocation8 + $0x48] sm:$0xff]  ;;  %v606_v26 = vld [vmem:[#allocation8 + $0xf8] sm:$0xff] }
  0x88   :  { %1031 = vmatpush1.bf16.msra.mxu1 %v1030_v62  ;;  %1001 = vmatprep.subr.bf16.mxu0 %v1000_v63  ;;  %v1084_v62 = vpack.c.bf16 %v632_v58, %v631_v56  ;;  %v1054_v63 = vpack.c.bf16 %v584_v60, %v583_v59  ;;  %v638_v29 = vld [vmem:[#allocation8 + $0x1f8] sm:$0xff] }
  0x89   :  { %1033 = vmatprep.subr.bf16.mxu1 %v1032_v3  ;;  %v1086_v3 = vpack.c.bf16 %v616_v2, %v615_v1  ;;  %v590_v31 = vld [vmem:[#allocation8 + $0x78] sm:$0xff] }
  0x8a   :  { %v1066_v33 = vpack.c.bf16 %v590_v31, %v589_v30  ;;  %v622_v35 = vld [vmem:[#allocation8 + $0x178] sm:$0xff] }
  0x8b   :  { %1003 = vmatpush1.bf16.msra.mxu0 %v1002_v6  ;;  %v633_v6 = vld [vmem:[#allocation8 + $0x1d0] sm:$0xff] }
  0x8c   :  { %1035 = vmatpush1.bf16.msra.mxu1 %v1034_v7  ;;  %1037 = vmatprep.subr.bf16.mxu0 %v1036_v11  ;;  %v1056_v7 = vpack.c.bf16 %v602_v5, %v601_v4  ;;  %v1088_v11 = vpack.c.bf16 %v634_v8, %v633_v6 }
  0x8d   :  { %1069 = vmatprep.subr.bf16.mxu1 %v1068_v15  ;;  %v1090_v15 = vpack.c.bf16 %v618_v14, %v617_v13 }
  0x8e   :  { %422 = vmatmul.mubr.f32.vlgmr.msra.gmra.mrb[4].mxu0 %v1364_v46 }
  0x8f   :  { %499 = vmatmul.mubr.f32.vlgmr.msra.gmra.mrb[4].mxu1 %v1364_v46  ;;  %427 = vmatprep.mubr.f32.mxu0 %v1268_v0  ;;  %v1070_v46 = vpack.c.bf16 %v608_v18, %v607_v17  ;;  %v604_v17 = vld [vmem:[#allocation8 + $0xe8] sm:$0xff]  ;;  %v635_v18 = vld [vmem:[#allocation8 + $0x1e0] sm:$0xff] }
  0x90   :  { %504 = vmatprep.mubr.f32.mxu1 %v1268_v0  ;;  %1039 = vmatpush3.bf16.msra.mxu0 %v1038_v16  ;;  %v593_v0 = vld [vmem:[#allocation8 + $0x90] sm:$0xff]  ;;  %v603_v16 = vld [vmem:[#allocation8 + $0xe0] sm:$0xff] }
  0x91   :  { %1071 = vmatpush3.bf16.msra.mxu1 %v1070_v46  ;;  %v1060_v46 = vpack.c.bf16 %v604_v17, %v603_v16 }
  0x92   :  { %428 = vmatmul.mubr.f32.gmra.mrb[6].mxu0 %v1368_v61  ;;  %1073 = vmatprep.subr.bf16.mxu1 %v1072_v24  ;;  %v1094_v24 = vpack.c.bf16 %v620_v23, %v619_v22 }
  0x93   :  { %505 = vmatmul.mubr.f32.gmra.mrb[6].mxu1 %v1368_v61  ;;  %v1040_v61 = vpack.c.bf16 %v594_v19, %v593_v0  ;;  %v636_v0 = vld [vmem:[#allocation8 + $0x1e8] sm:$0xff]  ;;  %v587_v19 = vld [vmem:[#allocation8 + $0x60] sm:$0xff] }
  0x94   :  { %v1062_v21 = vpack.c.bf16 %v588_v20, %v587_v19 }
  0x95   :  { %1041 = vmatprep.subr.bf16.mxu0 %v1040_v61  ;;  %1075 = vmatpush3.bf16.msra.mxu1 %v1074_v28  ;;  %v1092_v61 = vpack.c.bf16 %v636_v0, %v635_v18 }
  0x96   :  { %1043 = vmatpush3.bf16.msra.mxu0 %v1042_v25  ;;  %1077 = vmatprep.subr.bf16.mxu1 %v1076_v36  ;;  %v605_v25 = vld [vmem:[#allocation8 + $0xf0] sm:$0xff]  ;;  %v1098_v36 = vpack.c.bf16 %v622_v35, %v621_v34 }
  0x97   :  { %1045 = vmatprep.subr.bf16.mxu0 %v1044_v32  ;;  %v1064_v28 = vpack.c.bf16 %v606_v26, %v605_v25  ;;  %v1096_v32 = vpack.c.bf16 %v638_v29, %v637_v27 }
  0x99   :  { %1079 = vmatpush3.bf16.msra.mxu1 %v1078_v40 }
  0x9a   :  { %1047 = vmatpush3.bf16.msra.mxu0 %v1046_v37  ;;  %1081 = vmatprep.subr.bf16.mxu1 %v1080_v49 }
  0x9b   :  { %1049 = vmatprep.subr.bf16.mxu0 %v1048_v44 }
  0x9d   :  { %1083 = vmatpush3.bf16.msra.mxu1 %v1082_v53 }
  0x9e   :  { %1051 = vmatpush3.bf16.msra.mxu0 %v1050_v50  ;;  %1085 = vmatprep.subr.bf16.mxu1 %v1084_v62 }
  0x9f   :  { %1053 = vmatprep.subr.bf16.mxu0 %v1052_v57 }
  0xa1   :  { %1087 = vmatpush3.bf16.msra.mxu1 %v1086_v3 }
  0xa2   :  { %1055 = vmatpush3.bf16.msra.mxu0 %v1054_v63  ;;  %1089 = vmatprep.subr.bf16.mxu1 %v1088_v11 }
  0xa3   :  { %1057 = vmatprep.subr.bf16.mxu0 %v1056_v7 }
  0xa5   :  { %1091 = vmatpush3.bf16.msra.mxu1 %v1090_v15 }
  0xa6   :  { %1059 = vmatpush3.bf16.msra.mxu0 %v1058_v12  ;;  %1093 = vmatprep.subr.bf16.mxu1 %v1092_v61 }
  0xa7   :  { %1061 = vmatprep.subr.bf16.mxu0 %v1060_v46 }
  0xa9   :  { %1095 = vmatpush3.bf16.msra.mxu1 %v1094_v24 }
  0xaa   :  { %1063 = vmatpush3.bf16.msra.mxu0 %v1062_v21  ;;  %1097 = vmatprep.subr.bf16.mxu1 %v1096_v32 }
  0xab   :  { %1065 = vmatprep.subr.bf16.mxu0 %v1064_v28 }
  0xad   :  { %1099 = vmatpush3.bf16.msra.mxu1 %v1098_v36 }
  0xae   :  { %1067 = vmatpush3.bf16.msra.mxu0 %v1066_v33 }
 0x141   :  { %v205_v37 = vpop.f32.mrb[0].mxu0 }
 0x142   :  { %v824_v38 = vmul.f32 -1.442695, %v205_v37  ;;  %v282_v39 = vpop.f32.mrb[0].mxu1  ;;  %v207_v40 = vpop.f32.mrb[1].mxu0 }
 0x143   :  { %v826_v41 = vmul.f32 -1.442695, %v282_v39  ;;  %v825_v42 = vmul.f32 -1.442695, %v207_v40  ;;  %v284_v43 = vpop.f32.mrb[1].mxu1 }
 0x144   :  { %1110 = vpow2.f32 %v824_v38  ;;  %v827_v44 = vmul.f32 -1.442695, %v284_v43 }
 0x145   :  { %1112 = vpow2.f32 %v826_v41  ;;  %v211_v45 = vpop.f32.mrb[2].mxu0 }
 0x146   :  { %1114 = vpow2.f32 %v825_v42  ;;  %v828_v47 = vmul.f32 -1.442695, %v211_v45  ;;  %v288_v48 = vpop.f32.mrb[2].mxu1  ;;  %v213_v49 = vpop.f32.mrb[3].mxu0 }
 0x147   :  { %1116 = vpow2.f32 %v827_v44  ;;  %v830_v50 = vmul.f32 -1.442695, %v288_v48  ;;  %v829_v51 = vmul.f32 -1.442695, %v213_v49  ;;  %v290_v52 = vpop.f32.mrb[3].mxu1 }
 0x148   :  { %1118 = vpow2.f32 %v828_v47  ;;  %v831_v53 = vmul.f32 -1.442695, %v290_v52 }
 0x149   :  { %1120 = vpow2.f32 %v830_v50 }
 0x14a   :  { %1122 = vpow2.f32 %v829_v51 }
 0x14b   :  { %1124 = vpow2.f32 %v831_v53 }
 0x14e   :  { %v1111_v54 = vpop.eup %1110 }
 0x14f   :  { %v1113_v55 = vpop.eup %1112  ;;  %v535_v56 = vadd.f32 1.0, %v1111_v54 }
 0x150   :  { %v1115_v57 = vpop.eup %1114  ;;  %v537_v58 = vadd.f32 1.0, %v1113_v55 }
 0x151   :  { %v1117_v59 = vpop.eup %1116  ;;  %v536_v60 = vadd.f32 1.0, %v1115_v57  ;;  %1126 = vrcp.f32 %v535_v56 }
 0x152   :  { %v1119_v62 = vpop.eup %1118  ;;  %v538_v63 = vadd.f32 1.0, %v1117_v59  ;;  %1128 = vrcp.f32 %v537_v58 }
 0x153   :  { %v1121_v1 = vpop.eup %1120  ;;  %v539_v2 = vadd.f32 1.0, %v1119_v62  ;;  %1130 = vrcp.f32 %v536_v60 }
 0x154   :  { %v1123_v3 = vpop.eup %1122  ;;  %v541_v4 = vadd.f32 1.0, %v1121_v1  ;;  %1132 = vrcp.f32 %v538_v63 }
 0x155   :  { %v1125_v5 = vpop.eup %1124  ;;  %v540_v6 = vadd.f32 1.0, %v1123_v3  ;;  %1134 = vrcp.f32 %v539_v2 }
 0x156   :  { %v542_v7 = vadd.f32 1.0, %v1125_v5  ;;  %1136 = vrcp.f32 %v541_v4 }
 0x157   :  { %1138 = vrcp.f32 %v540_v6 }
 0x158   :  { %1140 = vrcp.f32 %v542_v7 }
 0x15b   :  { %v1127_v8 = vpop.eup %1126 }
 0x15c   :  { %v1129_v9 = vpop.eup %1128  ;;  %v559_v13 = vmul.f32 %v1127_v8, %v205_v37 }
 0x15d   :  { %v1131_v10 = vpop.eup %1130  ;;  %v561_v15 = vmul.f32 %v1129_v9, %v282_v39 }
 0x15e   :  { %v1133_v11 = vpop.eup %1132  ;;  %v560_v16 = vmul.f32 %v1131_v10, %v207_v40 }
 0x15f   :  { %v1135_v12 = vpop.eup %1134  ;;  %v562_v46 = vmul.f32 %v1133_v11, %v284_v43 }
 0x160   :  { %v1137_v14 = vpop.eup %1136  ;;  %v563_v24 = vmul.f32 %v1135_v12, %v211_v45 }
 0x161   :  { %v423_v17 = vpop.f32.mrb[4].mxu0  ;;  %v1139_v18 = vpop.eup %1138  ;;  %v565_v26 = vmul.f32 %v1137_v14, %v288_v48 }
 0x162   :  { %v567_v0 = vmul.f32 %v559_v13, %v423_v17  ;;  %v500_v19 = vpop.f32.mrb[4].mxu1  ;;  %v425_v20 = vpop.f32.mrb[5].mxu0  ;;  %v564_v27 = vmul.f32 %v1139_v18, %v213_v49 }
 0x163   :  { %v1141_v61 = vpop.eup %1140  ;;  %v569_v21 = vmul.f32 %v561_v15, %v500_v19  ;;  %v568_v22 = vmul.f32 %v560_v16, %v425_v20  ;;  %v502_v23 = vpop.f32.mrb[5].mxu1 }
 0x164   :  { %v570_v25 = vmul.f32 %v562_v46, %v502_v23  ;;  %v566_v29 = vmul.f32 %v1141_v61, %v290_v52 }
 0x165   :  { %v429_v28 = vpop.f32.mrb[6].mxu0  ;;  %703 = vmatprep.mubr.f32.mxu0 %v568_v22 }
 0x166   :  { %v571_v30 = vmul.f32 %v563_v24, %v429_v28  ;;  %v506_v31 = vpop.f32.mrb[6].mxu1  ;;  %778 = vmatprep.mubr.f32.mxu1 %v570_v25  ;;  %v431_v32 = vpop.f32.mrb[7].mxu0  ;;  %704 = vmatmul.mubr.f32.vlgmr.msra.gmra.mrb[8].mxu0 %v567_v0 }
 0x167   :  { %v573_v33 = vmul.f32 %v565_v26, %v506_v31  ;;  %v572_v34 = vmul.f32 %v564_v27, %v431_v32  ;;  %v508_v35 = vpop.f32.mrb[7].mxu1  ;;  %779 = vmatmul.mubr.f32.vlgmr.msra.gmra.mrb[8].mxu1 %v569_v21 }
 0x168   :  { %v574_v36 = vmul.f32 %v566_v29, %v508_v35 }
 0x169   :  { %708 = vmatprep.mubr.f32.mxu0 %v572_v34 }
 0x16a   :  { %783 = vmatprep.mubr.f32.mxu1 %v574_v36  ;;  %709 = vmatmul.mubr.f32.gmra.mrb[10].mxu0 %v571_v30 }
 0x16b   :  { %784 = vmatmul.mubr.f32.gmra.mrb[10].mxu1 %v573_v33 }
 0x239   :  { %v864_v37 = vpop.f32.mrb[8].mxu0 }
 0x23a   :  { %v902_v38 = vpop.f32.mrb[8].mxu1  ;;  %v865_v39 = vpop.f32.mrb[9].mxu0 }
 0x23b   :  { %v866_v40 = vadd.f32 %v865_v39, %v864_v37  ;;  %v903_v41 = vpop.f32.mrb[9].mxu1 }
 0x23c   :  { %v904_v42 = vadd.f32 %v903_v41, %v902_v38 }
 0x23d   :  { %v867_v43 = vpop.f32.mrb[10].mxu0 }
 0x23e   :  { %v781_v44 = vadd.f32 %v904_v42, %v866_v40  ;;  %v905_v45 = vpop.f32.mrb[10].mxu1  ;;  %v868_v47 = vpop.f32.mrb[11].mxu0 }
 0x23f   :  { %v869_v48 = vadd.f32 %v868_v47, %v867_v43  ;;  %v906_v49 = vpop.f32.mrb[11].mxu1 }
 0x240   :  { %793 = vst [vmem:[#allocation10] sm:$0xff] %v781_v44  ;;  %v907_v50 = vadd.f32 %v906_v49, %v905_v45 }
 0x242   :  { %v786_v51 = vadd.f32 %v907_v50, %v869_v48 }
 0x244   :  { %794 = vst [vmem:[#allocation10 + $0x8] sm:$0xff] %v786_v51 }
 0x245   :  { %1241 = shalt.err (!%p1238_p8)
}
 0x246   :  { %s1242_s17 = scalar_lea.hbm %s1401_s4, 256 }
 0x247   :  { %p1243_p9 = scmp.ne.s32.totalorder %s1401_s4, %s1242_s17  ;;  %p1246_p10 = scmp.lt.u32.totalorder %s1242_s17, %s1401_s4 }
 0x249   :  { %p1248_p11 = pnand %p1246_p10, %p1243_p9 }
 0x24b   :  { %1251 = shalt.err (!%p1248_p11)
}
 0x24c   :  { %816 = dma.vmem_to_hbm [thread:$0]  %s811_s26, 256, %s1401_s4, [#allocation4], %s1264_s1, %s1264_s1, %s1265_s13  }
 0x24d   :  { %1258 = dma.done.wait [#allocation4], 256  }
 0x24e   :  { %1259 = vsyncadd [#allocation4], 4294967040 }
 0x24f   :  { %820 = vsyncpa [#allocation3], 1 }
 0x250   :  { %821 = vsyncpa [#allocation6], 1 }
 0x251   :  { %822 = vsyncpa [#allocation9], 1 }
 0x252   :  { %823 = vsyncpa [#allocation4], 1 }

</bundles_post_ra>
